<compile_context>
chip_gen: v6e
topology: v6e:2x2x1
jax: 0.10.0
libtpu: 0.0.40
codegen_flags: <defaults>
</compile_context>

<pallas_src>
import functools

import jax
import jax.numpy as jnp
import numpy as np
from jax.experimental import pallas as pl
from jax.experimental.pallas import tpu as pltpu


def _round_up(x, m):
    return ((x + m - 1) // m) * m


def _generator_seq_kernel(
    idx_ref,      # SMEM (T*Bp*2,) int32 scalar prefetch: [t, b, {prev, parent+A}]
    h0_ref,       # (Bp, H)   f32  initial hidden state
    tfold_ref,    # (Vk, 3H)  wdt  emb_table @ [Wir|Wiz|Win]; zero rows >= V
    wh_ref,       # (H, 3H)   wdt  [Whr|Whz|Whn]
    bi_ref,       # (1, 3H)   f32  [bir+bhr | biz+bhz | bin]
    bhn_ref,      # (1, H)    f32  bhn (stays inside r * (...))
    wout_ref,     # (H, Vp)   wdt  rnn2out weight; zero cols >= V
    bout_ref,     # (1, Vp)   f32  rnn2out bias; -1e30 in cols >= V
    logp_ref,     # (Bp, Vp)  f32  log-probs block for step t
    hout_ref,     # (Bp, H)   f32  hidden carry, VMEM-resident across the T axis
):
    t = pl.program_id(0)
    Bp, H = h0_ref.shape
    Vk = tfold_ref.shape[0]
    wdt = tfold_ref.dtype

    # hidden carry lives in the (constant-index) output block for the whole grid
    @pl.when(t == 0)
    def _():
        hout_ref[...] = h0_ref[...]

    h = hout_ref[...]                                              # (Bp, H) f32

    # --- fused embedding lookup + concat as a two-hot GEMM --------------------
    # indices come from SMEM (scalar prefetch); build (Bp, 1) index columns,
    # then a lane-dense (Bp, Vk) two-hot mask.  Bp is the sublane-rounded batch
    # (small), so the static unroll below is a handful of vreg selects.
    base = t * (2 * Bp)
    sub = jax.lax.broadcasted_iota(jnp.int32, (Bp, 1), 0)
    prev_col = jnp.zeros((Bp, 1), jnp.int32)
    par_col = jnp.zeros((Bp, 1), jnp.int32)
    for b in range(Bp):                                            # static unroll
        prev_col = jnp.where(sub == b, idx_ref[base + 2 * b], prev_col)
        par_col = jnp.where(sub == b, idx_ref[base + 2 * b + 1], par_col)
    lane = jax.lax.broadcasted_iota(jnp.int32, (Bp, Vk), 1)
    twohot = jnp.logical_or(lane == prev_col, lane == par_col).astype(wdt)

    # --- packed GRU cell (PyTorch gate order r, z, n); input GEMM pre-folded --
    gi = jnp.dot(twohot, tfold_ref[...], preferred_element_type=jnp.float32) + bi_ref[...]
    gh = jnp.dot(h.astype(wdt), wh_ref[...], preferred_element_type=jnp.float32)

    r = jax.nn.sigmoid(gi[:, 0:H] + gh[:, 0:H])
    z = jax.nn.sigmoid(gi[:, H:2 * H] + gh[:, H:2 * H])
    n = jnp.tanh(gi[:, 2 * H:3 * H] + r * (gh[:, 2 * H:3 * H] + bhn_ref[...]))
    h_new = (1.0 - z) * n + z * h                                   # (Bp, H) f32

    # --- output projection + log_softmax (pads forced to -1e30, all in f32) ---
    logits = jnp.dot(h_new.astype(wdt), wout_ref[...],
                     preferred_element_type=jnp.float32) + bout_ref[...]
    m = jnp.max(logits, axis=1, keepdims=True)
    shifted = logits - m
    lse = jnp.log(jnp.sum(jnp.exp(shifted), axis=1, keepdims=True))

    logp_ref[...] = shifted - lse
    hout_ref[...] = h_new


def pack_params(raw, weight_dtype=jnp.bfloat16):
    """Fold/pad raw per-gate parameters into the fused kernel layout (one-time)."""
    A, Ea = raw["actions_emb"].shape
    R, Er = raw["rules_emb"].shape
    H = raw["whr_t"].shape[0]
    V = A + R
    Vk = _round_up(V, 128)          # K dim of the folded input GEMM (lane-dense two-hot)
    Vp = _round_up(V, 128)          # output vocab lanes

    # block-diagonal embedding table: twohot(prev | parent+A) @ table == concat(embs)
    emb_table = jnp.zeros((V, Ea + Er), jnp.float32)
    emb_table = emb_table.at[:A, :Ea].set(raw["actions_emb"])
    emb_table = emb_table.at[A:, Ea:].set(raw["rules_emb"])

    wi_all = jnp.concatenate([raw["wir_t"], raw["wiz_t"], raw["win_t"]], axis=1)   # (E, 3H)
    # fold embedding gather + concat + input GEMM into a single (V, 3H) table
    folded = jnp.dot(emb_table, wi_all, precision=jax.lax.Precision.HIGHEST)       # (V, 3H)
    tfold = jnp.zeros((Vk, 3 * H), jnp.float32).at[:V].set(folded)

    wh_all = jnp.concatenate([raw["whr_t"], raw["whz_t"], raw["whn_t"]], axis=1)   # (H, 3H)
    bi_all = jnp.concatenate(
        [raw["bir"] + raw["bhr"], raw["biz"] + raw["bhz"], raw["bin"]], axis=1)    # (1, 3H)
    bhn = raw["bhn"]                                                               # (1, H)

    wout_pad = jnp.zeros((H, Vp), jnp.float32).at[:, :V].set(raw["wout_t"])
    # -1e30 sentinel must stay f32 (it overflows to -inf in bf16)
    bout_pad = jnp.full((1, Vp), -1e30, jnp.float32).at[:, :V].set(raw["bout"])

    return {
        "tfold": tfold.astype(weight_dtype),
        "wh_all": wh_all.astype(weight_dtype),
        "wout_pad": wout_pad.astype(weight_dtype),
        "bi_all": bi_all.astype(jnp.float32),
        "bhn": bhn.astype(jnp.float32),
        "bout_pad": bout_pad,
        "actions_len": A, "vocab": V, "hidden": H,
    }


def generator_unroll(packed, prev_ids, parent_ids, hidden0):
    """Run T GRU decode steps in a single pallas_call.

    prev_ids, parent_ids: (T, B) int; hidden0: (1, B, H) f32.
    Returns (log_probs (T, B, A+R), hidden_T (1, B, H)).
    """
    A = packed["actions_len"]
    V = packed["vocab"]
    H = packed["hidden"]
    Vk = packed["tfold"].shape[0]
    Vp = packed["wout_pad"].shape[1]

    T, B = prev_ids.shape
    Bp = _round_up(B, 8)                     # sublane-align batch (pad rows discarded)

    # flat SMEM index table: layout [t, b, {prev, parent + A}]
    # (padded batch rows get prev=parent=0; their outputs are sliced off below)
    idx = jnp.stack([prev_ids.astype(jnp.int32),
                     parent_ids.astype(jnp.int32) + A], axis=-1)            # (T, B, 2)
    idx = jnp.pad(idx, ((0, 0), (0, Bp - B), (0, 0)))                       # (T, Bp, 2)
    idx_flat = idx.reshape(-1)                                              # (T*Bp*2,)

    # hidden padded once per sequence (not per step)
    h0 = jnp.pad(hidden0[0].astype(jnp.float32), ((0, Bp - B), (0, 0)))     # (Bp, H)

    const = lambda t, idx: (0, 0)            # weights / h0: DMA'd once, stay resident

    grid_spec = pltpu.PrefetchScalarGridSpec(
        num_scalar_prefetch=1,
        grid=(T,),
        in_specs=[
            pl.BlockSpec((Bp, H), const),          # h0
            pl.BlockSpec((Vk, 3 * H), const),      # folded input weights
            pl.BlockSpec((H, 3 * H), const),       # hidden->hidden weights
            pl.BlockSpec((1, 3 * H), const),       # fused r/z/n biases
            pl.BlockSpec((1, H), const),           # bhn
            pl.BlockSpec((H, Vp), const),          # rnn2out weight
            pl.BlockSpec((1, Vp), const),          # rnn2out bias (-1e30 pads)
        ],
        out_specs=(
            pl.BlockSpec((None, Bp, Vp), lambda t, idx: (t, 0, 0)),   # per-step log-probs
            pl.BlockSpec((Bp, H), const),                             # final hidden carry
        ),
    )

    logp_pad, h_last = pl.pallas_call(
        _generator_seq_kernel,
        grid_spec=grid_spec,
        out_shape=(
            jax.ShapeDtypeStruct((T, Bp, Vp), jnp.float32),
            jax.ShapeDtypeStruct((Bp, H), jnp.float32),
        ),
        compiler_params=pltpu.CompilerParams(
            dimension_semantics=("arbitrary",)),   # recurrent time axis
    )(idx_flat, h0, packed["tfold"], packed["wh_all"], packed["bi_all"],
      packed["bhn"], packed["wout_pad"], packed["bout_pad"])

    return logp_pad[:, :B, :V], h_last[:B][None, :, :]


def generator_forward(packed, prev_idx, parent_idx, hidden):
    """Single GRU step matching Generator.forward(state, hidden)."""
    logp, h_new = generator_unroll(packed, prev_idx[None], parent_idx[None], hidden)
    return logp[0], h_new


def init_params(key, actions_len, rules_len, a_emb_dim, r_emb_dim, hidden_dim):
    """Deterministic synthetic parameter init (shapes match nn.Module __init__)."""
    E = a_emb_dim + r_emb_dim
    H = hidden_dim
    V = actions_len + rules_len
    keys = jax.random.split(key, 16)
    scale = 0.1

    def rnd(k, shape):
        return (scale * jax.random.normal(k, shape)).astype(jnp.float32)

    return {
        "actions_emb": rnd(keys[0], (actions_len, a_emb_dim)),
        "rules_emb": rnd(keys[1], (rules_len, r_emb_dim)),
        "wir_t": rnd(keys[2], (E, H)), "wiz_t": rnd(keys[3], (E, H)), "win_t": rnd(keys[4], (E, H)),
        "whr_t": rnd(keys[5], (H, H)), "whz_t": rnd(keys[6], (H, H)), "whn_t": rnd(keys[7], (H, H)),
        "bir": rnd(keys[8], (1, H)), "biz": rnd(keys[9], (1, H)), "bin": rnd(keys[10], (1, H)),
        "bhr": rnd(keys[11], (1, H)), "bhz": rnd(keys[12], (1, H)), "bhn": rnd(keys[13], (1, H)),
        "wout_t": rnd(keys[14], (H, V)), "bout": rnd(keys[15], (1, V)),
    }


def _mm(a, b):
    return jnp.dot(a, b, precision=jax.lax.Precision.HIGHEST)


def _reference_unroll(params, prev_ids, parent_ids, hidden0):
    """Pure-JAX f32 reference (per-gate, un-fused) running the T-step loop."""
    h = hidden0[0]
    logps = []
    for t in range(prev_ids.shape[0]):
        prev_emb = jnp.take(params["actions_emb"], prev_ids[t].astype(jnp.int32), axis=0)
        parent_emb = jnp.take(params["rules_emb"], parent_ids[t].astype(jnp.int32), axis=0)
        x = jnp.concatenate([prev_emb, parent_emb], axis=1)
        r = jax.nn.sigmoid(_mm(x, params["wir_t"]) + params["bir"]
                           + _mm(h, params["whr_t"]) + params["bhr"])
        z = jax.nn.sigmoid(_mm(x, params["wiz_t"]) + params["biz"]
                           + _mm(h, params["whz_t"]) + params["bhz"])
        n = jnp.tanh(_mm(x, params["win_t"]) + params["bin"]
                     + r * (_mm(h, params["whn_t"]) + params["bhn"]))
        h = (1.0 - z) * n + z * h
        logits = _mm(h, params["wout_t"]) + params["bout"]
        logps.append(jax.nn.log_softmax(logits, axis=1))
    return jnp.stack(logps, axis=0), h[None]


if __name__ == "__main__":
    actions_len = 12
    rules_len = 10
    actions_embedding_dim = 8
    rules_embedding_dim = 8
    hidden_dim = 32
    batch = 4
    seq_len = 8

    key = jax.random.PRNGKey(0)
    pkey, k1, k2, k3 = jax.random.split(key, 4)
    params = init_params(
        pkey, actions_len, rules_len, actions_embedding_dim, rules_embedding_dim, hidden_dim)

    prev_ids = jax.random.randint(k1, (seq_len, batch), 0, actions_len, dtype=jnp.int32)
    parent_ids = jax.random.randint(k2, (seq_len, batch), 0, rules_len, dtype=jnp.int32)
    hidden0 = (0.1 * jax.random.normal(k3, (1, batch, hidden_dim))).astype(jnp.float32)

    ref_logp, ref_h = _reference_unroll(params, prev_ids, parent_ids, hidden0)

    # --- f32-packed weights: strict correctness check -------------------------
    packed_f32 = pack_params(params, weight_dtype=jnp.float32)
    unroll_f32 = jax.jit(functools.partial(generator_unroll, packed_f32))
    logp32, h32 = unroll_f32(prev_ids, parent_ids, hidden0)
    jax.block_until_ready((logp32, h32))
    assert logp32.shape == (seq_len, batch, actions_len + rules_len)
    assert h32.shape == (1, batch, hidden_dim)
    assert np.allclose(np.asarray(logp32), np.asarray(ref_logp), atol=2e-4, rtol=2e-4)
    assert np.allclose(np.asarray(h32), np.asarray(ref_h), atol=2e-4, rtol=2e-4)

    # --- bf16-packed weights (default, MXU-native): loose tolerance -----------
    packed_bf16 = pack_params(params)
    unroll_bf16 = jax.jit(functools.partial(generator_unroll, packed_bf16))
    logpb, hb = unroll_bf16(prev_ids, parent_ids, hidden0)
    jax.block_until_ready((logpb, hb))
    assert np.allclose(np.asarray(logpb), np.asarray(ref_logp), atol=3e-2)
    assert np.allclose(np.asarray(hb), np.asarray(ref_h), atol=3e-2)

    # --- single-step forward() (original module semantics) --------------------
    fwd = jax.jit(functools.partial(generator_forward, packed_f32))
    logp1, h1 = fwd(prev_ids[0], parent_ids[0], hidden0)
    jax.block_until_ready((logp1, h1))
    ref1_logp, ref1_h = _reference_unroll(params, prev_ids[:1], parent_ids[:1], hidden0)
    assert logp1.shape == (batch, actions_len + rules_len)
    assert h1.shape == (1, batch, hidden_dim)
    assert np.allclose(np.asarray(logp1), np.asarray(ref1_logp[0]), atol=2e-4, rtol=2e-4)
    assert np.allclose(np.asarray(h1), np.asarray(ref1_h), atol=2e-4, rtol=2e-4)

    print("KERNEL_OK")
</pallas_src>

<mosaic_0001>
module attributes {stable_mosaic.version = 11 : i64} {
  func.func @_generator_seq_kernel(%arg0: i32, %arg1: memref<128xi32, #tpu.memory_space<smem>>, %arg2: memref<8x32xf32, #tpu.memory_space<vmem>>, %arg3: memref<128x96xf32, #tpu.memory_space<vmem>>, %arg4: memref<32x96xf32, #tpu.memory_space<vmem>>, %arg5: memref<1x96xf32, #tpu.memory_space<vmem>>, %arg6: memref<1x32xf32, #tpu.memory_space<vmem>>, %arg7: memref<32x128xf32, #tpu.memory_space<vmem>>, %arg8: memref<1x128xf32, #tpu.memory_space<vmem>>, %arg9: memref<1x8x128xf32, #tpu.memory_space<vmem>>, %arg10: memref<8x32xf32, #tpu.memory_space<vmem>>) attributes {dimension_semantics = [#tpu.dimension_semantics<arbitrary>], iteration_bounds = array<i64: 8>, scalar_prefetch = 1 : i64, scratch_operands = 0 : i64, tpu.core_type = #tpu.core_type<tc>, window_params = [{pipeline_mode = #tpu.pipeline_mode<synchronous>, transform_indices = @transform_0, window_bounds = array<i64: 8, 32>}, {pipeline_mode = #tpu.pipeline_mode<synchronous>, transform_indices = @transform_1, window_bounds = array<i64: 128, 96>}, {pipeline_mode = #tpu.pipeline_mode<synchronous>, transform_indices = @transform_2, window_bounds = array<i64: 32, 96>}, {pipeline_mode = #tpu.pipeline_mode<synchronous>, transform_indices = @transform_3, window_bounds = array<i64: 1, 96>}, {pipeline_mode = #tpu.pipeline_mode<synchronous>, transform_indices = @transform_4, window_bounds = array<i64: 1, 32>}, {pipeline_mode = #tpu.pipeline_mode<synchronous>, transform_indices = @transform_5, window_bounds = array<i64: 32, 128>}, {pipeline_mode = #tpu.pipeline_mode<synchronous>, transform_indices = @transform_6, window_bounds = array<i64: 1, 128>}, {transform_indices = @transform_7, window_bounds = array<i64: 1, 8, 128>}, {pipeline_mode = #tpu.pipeline_mode<synchronous>, transform_indices = @transform_8, window_bounds = array<i64: 8, 32>}]} {
    %c0_i32 = arith.constant 0 : i32
    %0 = arith.cmpi eq, %arg0, %c0_i32 : i32
    %1 = arith.extui %0 : i1 to i32
    %c0_i32_0 = arith.constant 0 : i32
    %2 = arith.cmpi ne, %1, %c0_i32_0 : i32
    scf.if %2 {
      %c0_57 = arith.constant 0 : index
      %c0_58 = arith.constant 0 : index
      %191 = vector.load %arg2[%c0_57, %c0_58] : memref<8x32xf32, #tpu.memory_space<vmem>>, vector<8x32xf32>
      %c0_59 = arith.constant 0 : index
      %c0_60 = arith.constant 0 : index
      %192 = vector.load %arg10[%c0_59, %c0_60] : memref<8x32xf32, #tpu.memory_space<vmem>>, vector<8x32xf32>
      tpu.vector_store %arg10[%c0_59, %c0_60], %191 {strides = array<i32>} : memref<8x32xf32, #tpu.memory_space<vmem>>, vector<8x32xf32>,
    } else {
    }
    %c0 = arith.constant 0 : index
    %c0_1 = arith.constant 0 : index
    %3 = vector.load %arg10[%c0, %c0_1] : memref<8x32xf32, #tpu.memory_space<vmem>>, vector<8x32xf32>
    %c16_i32 = arith.constant 16 : i32
    %4 = arith.muli %arg0, %c16_i32 : i32
    %5 = tpu.iota {dimensions = array<i32: 0>} : vector<8x1xi32>
    %c0_i32_2 = arith.constant 0 : i32
    %6 = vector.broadcast %c0_i32_2 : i32 to vector<8x1xi32>
    %c0_i32_3 = arith.constant 0 : i32
    %7 = vector.broadcast %c0_i32_3 : i32 to vector<8x1xi32>
    %c0_i32_4 = arith.constant 0 : i32
    %8 = vector.broadcast %c0_i32_4 : i32 to vector<8x1xi32>
    %9 = arith.cmpi eq, %5, %8 : vector<8x1xi32>
    %c0_i32_5 = arith.constant 0 : i32
    %10 = arith.addi %4, %c0_i32_5 : i32
    %11 = arith.index_cast %10 : i32 to index
    %12 = memref.load %arg1[%11] : memref<128xi32, #tpu.memory_space<smem>>
    %13 = vector.broadcast %12 : i32 to vector<8x1xi32>
    %14 = arith.select %9, %13, %6 : vector<8x1xi1>, vector<8x1xi32>
    %c0_i32_6 = arith.constant 0 : i32
    %15 = vector.broadcast %c0_i32_6 : i32 to vector<8x1xi32>
    %16 = arith.cmpi eq, %5, %15 : vector<8x1xi32>
    %c0_i32_7 = arith.constant 0 : i32
    %17 = arith.addi %4, %c0_i32_7 : i32
    %c1_i32 = arith.constant 1 : i32
    %18 = arith.addi %17, %c1_i32 : i32
    %19 = arith.index_cast %18 : i32 to index
    %20 = memref.load %arg1[%19] : memref<128xi32, #tpu.memory_space<smem>>
    %21 = vector.broadcast %20 : i32 to vector<8x1xi32>
    %22 = arith.select %16, %21, %7 : vector<8x1xi1>, vector<8x1xi32>
    %c1_i32_8 = arith.constant 1 : i32
    %23 = vector.broadcast %c1_i32_8 : i32 to vector<8x1xi32>
    %24 = arith.cmpi eq, %5, %23 : vector<8x1xi32>
    %c2_i32 = arith.constant 2 : i32
    %25 = arith.addi %4, %c2_i32 : i32
    %26 = arith.index_cast %25 : i32 to index
    %27 = memref.load %arg1[%26] : memref<128xi32, #tpu.memory_space<smem>>
    %28 = vector.broadcast %27 : i32 to vector<8x1xi32>
    %29 = arith.select %24, %28, %14 : vector<8x1xi1>, vector<8x1xi32>
    %c1_i32_9 = arith.constant 1 : i32
    %30 = vector.broadcast %c1_i32_9 : i32 to vector<8x1xi32>
    %31 = arith.cmpi eq, %5, %30 : vector<8x1xi32>
    %c2_i32_10 = arith.constant 2 : i32
    %32 = arith.addi %4, %c2_i32_10 : i32
    %c1_i32_11 = arith.constant 1 : i32
    %33 = arith.addi %32, %c1_i32_11 : i32
    %34 = arith.index_cast %33 : i32 to index
    %35 = memref.load %arg1[%34] : memref<128xi32, #tpu.memory_space<smem>>
    %36 = vector.broadcast %35 : i32 to vector<8x1xi32>
    %37 = arith.select %31, %36, %22 : vector<8x1xi1>, vector<8x1xi32>
    %c2_i32_12 = arith.constant 2 : i32
    %38 = vector.broadcast %c2_i32_12 : i32 to vector<8x1xi32>
    %39 = arith.cmpi eq, %5, %38 : vector<8x1xi32>
    %c4_i32 = arith.constant 4 : i32
    %40 = arith.addi %4, %c4_i32 : i32
    %41 = arith.index_cast %40 : i32 to index
    %42 = memref.load %arg1[%41] : memref<128xi32, #tpu.memory_space<smem>>
    %43 = vector.broadcast %42 : i32 to vector<8x1xi32>
    %44 = arith.select %39, %43, %29 : vector<8x1xi1>, vector<8x1xi32>
    %c2_i32_13 = arith.constant 2 : i32
    %45 = vector.broadcast %c2_i32_13 : i32 to vector<8x1xi32>
    %46 = arith.cmpi eq, %5, %45 : vector<8x1xi32>
    %c4_i32_14 = arith.constant 4 : i32
    %47 = arith.addi %4, %c4_i32_14 : i32
    %c1_i32_15 = arith.constant 1 : i32
    %48 = arith.addi %47, %c1_i32_15 : i32
    %49 = arith.index_cast %48 : i32 to index
    %50 = memref.load %arg1[%49] : memref<128xi32, #tpu.memory_space<smem>>
    %51 = vector.broadcast %50 : i32 to vector<8x1xi32>
    %52 = arith.select %46, %51, %37 : vector<8x1xi1>, vector<8x1xi32>
    %c3_i32 = arith.constant 3 : i32
    %53 = vector.broadcast %c3_i32 : i32 to vector<8x1xi32>
    %54 = arith.cmpi eq, %5, %53 : vector<8x1xi32>
    %c6_i32 = arith.constant 6 : i32
    %55 = arith.addi %4, %c6_i32 : i32
    %56 = arith.index_cast %55 : i32 to index
    %57 = memref.load %arg1[%56] : memref<128xi32, #tpu.memory_space<smem>>
    %58 = vector.broadcast %57 : i32 to vector<8x1xi32>
    %59 = arith.select %54, %58, %44 : vector<8x1xi1>, vector<8x1xi32>
    %c3_i32_16 = arith.constant 3 : i32
    %60 = vector.broadcast %c3_i32_16 : i32 to vector<8x1xi32>
    %61 = arith.cmpi eq, %5, %60 : vector<8x1xi32>
    %c6_i32_17 = arith.constant 6 : i32
    %62 = arith.addi %4, %c6_i32_17 : i32
    %c1_i32_18 = arith.constant 1 : i32
    %63 = arith.addi %62, %c1_i32_18 : i32
    %64 = arith.index_cast %63 : i32 to index
    %65 = memref.load %arg1[%64] : memref<128xi32, #tpu.memory_space<smem>>
    %66 = vector.broadcast %65 : i32 to vector<8x1xi32>
    %67 = arith.select %61, %66, %52 : vector<8x1xi1>, vector<8x1xi32>
    %c4_i32_19 = arith.constant 4 : i32
    %68 = vector.broadcast %c4_i32_19 : i32 to vector<8x1xi32>
    %69 = arith.cmpi eq, %5, %68 : vector<8x1xi32>
    %c8_i32 = arith.constant 8 : i32
    %70 = arith.addi %4, %c8_i32 : i32
    %71 = arith.index_cast %70 : i32 to index
    %72 = memref.load %arg1[%71] : memref<128xi32, #tpu.memory_space<smem>>
    %73 = vector.broadcast %72 : i32 to vector<8x1xi32>
    %74 = arith.select %69, %73, %59 : vector<8x1xi1>, vector<8x1xi32>
    %c4_i32_20 = arith.constant 4 : i32
    %75 = vector.broadcast %c4_i32_20 : i32 to vector<8x1xi32>
    %76 = arith.cmpi eq, %5, %75 : vector<8x1xi32>
    %c8_i32_21 = arith.constant 8 : i32
    %77 = arith.addi %4, %c8_i32_21 : i32
    %c1_i32_22 = arith.constant 1 : i32
    %78 = arith.addi %77, %c1_i32_22 : i32
    %79 = arith.index_cast %78 : i32 to index
    %80 = memref.load %arg1[%79] : memref<128xi32, #tpu.memory_space<smem>>
    %81 = vector.broadcast %80 : i32 to vector<8x1xi32>
    %82 = arith.select %76, %81, %67 : vector<8x1xi1>, vector<8x1xi32>
    %c5_i32 = arith.constant 5 : i32
    %83 = vector.broadcast %c5_i32 : i32 to vector<8x1xi32>
    %84 = arith.cmpi eq, %5, %83 : vector<8x1xi32>
    %c10_i32 = arith.constant 10 : i32
    %85 = arith.addi %4, %c10_i32 : i32
    %86 = arith.index_cast %85 : i32 to index
    %87 = memref.load %arg1[%86] : memref<128xi32, #tpu.memory_space<smem>>
    %88 = vector.broadcast %87 : i32 to vector<8x1xi32>
    %89 = arith.select %84, %88, %74 : vector<8x1xi1>, vector<8x1xi32>
    %c5_i32_23 = arith.constant 5 : i32
    %90 = vector.broadcast %c5_i32_23 : i32 to vector<8x1xi32>
    %91 = arith.cmpi eq, %5, %90 : vector<8x1xi32>
    %c10_i32_24 = arith.constant 10 : i32
    %92 = arith.addi %4, %c10_i32_24 : i32
    %c1_i32_25 = arith.constant 1 : i32
    %93 = arith.addi %92, %c1_i32_25 : i32
    %94 = arith.index_cast %93 : i32 to index
    %95 = memref.load %arg1[%94] : memref<128xi32, #tpu.memory_space<smem>>
    %96 = vector.broadcast %95 : i32 to vector<8x1xi32>
    %97 = arith.select %91, %96, %82 : vector<8x1xi1>, vector<8x1xi32>
    %c6_i32_26 = arith.constant 6 : i32
    %98 = vector.broadcast %c6_i32_26 : i32 to vector<8x1xi32>
    %99 = arith.cmpi eq, %5, %98 : vector<8x1xi32>
    %c12_i32 = arith.constant 12 : i32
    %100 = arith.addi %4, %c12_i32 : i32
    %101 = arith.index_cast %100 : i32 to index
    %102 = memref.load %arg1[%101] : memref<128xi32, #tpu.memory_space<smem>>
    %103 = vector.broadcast %102 : i32 to vector<8x1xi32>
    %104 = arith.select %99, %103, %89 : vector<8x1xi1>, vector<8x1xi32>
    %c6_i32_27 = arith.constant 6 : i32
    %105 = vector.broadcast %c6_i32_27 : i32 to vector<8x1xi32>
    %106 = arith.cmpi eq, %5, %105 : vector<8x1xi32>
    %c12_i32_28 = arith.constant 12 : i32
    %107 = arith.addi %4, %c12_i32_28 : i32
    %c1_i32_29 = arith.constant 1 : i32
    %108 = arith.addi %107, %c1_i32_29 : i32
    %109 = arith.index_cast %108 : i32 to index
    %110 = memref.load %arg1[%109] : memref<128xi32, #tpu.memory_space<smem>>
    %111 = vector.broadcast %110 : i32 to vector<8x1xi32>
    %112 = arith.select %106, %111, %97 : vector<8x1xi1>, vector<8x1xi32>
    %c7_i32 = arith.constant 7 : i32
    %113 = vector.broadcast %c7_i32 : i32 to vector<8x1xi32>
    %114 = arith.cmpi eq, %5, %113 : vector<8x1xi32>
    %c14_i32 = arith.constant 14 : i32
    %115 = arith.addi %4, %c14_i32 : i32
    %116 = arith.index_cast %115 : i32 to index
    %117 = memref.load %arg1[%116] : memref<128xi32, #tpu.memory_space<smem>>
    %118 = vector.broadcast %117 : i32 to vector<8x1xi32>
    %119 = arith.select %114, %118, %104 : vector<8x1xi1>, vector<8x1xi32>
    %c7_i32_30 = arith.constant 7 : i32
    %120 = vector.broadcast %c7_i32_30 : i32 to vector<8x1xi32>
    %121 = arith.cmpi eq, %5, %120 : vector<8x1xi32>
    %c14_i32_31 = arith.constant 14 : i32
    %122 = arith.addi %4, %c14_i32_31 : i32
    %c1_i32_32 = arith.constant 1 : i32
    %123 = arith.addi %122, %c1_i32_32 : i32
    %124 = arith.index_cast %123 : i32 to index
    %125 = memref.load %arg1[%124] : memref<128xi32, #tpu.memory_space<smem>>
    %126 = vector.broadcast %125 : i32 to vector<8x1xi32>
    %127 = arith.select %121, %126, %112 : vector<8x1xi1>, vector<8x1xi32>
    %128 = tpu.iota {dimensions = array<i32: 1>} : vector<8x128xi32>
    %129 = vector.broadcast %119 : vector<8x1xi32> to vector<8x128xi32>
    %130 = arith.cmpi eq, %128, %129 : vector<8x128xi32>
    %131 = vector.broadcast %127 : vector<8x1xi32> to vector<8x128xi32>
    %132 = arith.cmpi eq, %128, %131 : vector<8x128xi32>
    %133 = arith.ori %130, %132 : vector<8x128xi1>
    %134 = arith.extui %133 : vector<8x128xi1> to vector<8x128xi32>
    %135 = arith.sitofp %134 : vector<8x128xi32> to vector<8x128xf32>
    %c0_33 = arith.constant 0 : index
    %c0_34 = arith.constant 0 : index
    %136 = vector.load %arg3[%c0_33, %c0_34] : memref<128x96xf32, #tpu.memory_space<vmem>>, vector<128x96xf32>
    %cst = arith.constant dense<0.000000e+00> : vector<8x96xf32>
    %137 = tpu.matmul %135, %136, %cst {dimension_numbers = #tpu.dot_dimension_numbers<[1], [0], [0], [1], [0, 0, 1, 1], [], []>} : vector<8x128xf32>, vector<128x96xf32>, vector<8x96xf32> -> vector<8x96xf32>
    %c0_35 = arith.constant 0 : index
    %c0_36 = arith.constant 0 : index
    %138 = vector.load %arg5[%c0_35, %c0_36] : memref<1x96xf32, #tpu.memory_space<vmem>>, vector<1x96xf32>
    %139 = vector.broadcast %138 : vector<1x96xf32> to vector<8x96xf32>
    %140 = arith.addf %137, %139 : vector<8x96xf32>
    %c0_37 = arith.constant 0 : index
    %c0_38 = arith.constant 0 : index
    %141 = vector.load %arg4[%c0_37, %c0_38] : memref<32x96xf32, #tpu.memory_space<vmem>>, vector<32x96xf32>
    %cst_39 = arith.constant dense<0.000000e+00> : vector<8x96xf32>
    %142 = tpu.matmul %3, %141, %cst_39 {dimension_numbers = #tpu.dot_dimension_numbers<[1], [0], [0], [1], [0, 0, 1, 1], [], []>} : vector<8x32xf32>, vector<32x96xf32>, vector<8x96xf32> -> vector<8x96xf32>
    %143 = vector.extract_strided_slice %140 {offsets = [0, 0], sizes = [8, 32], strides = [1, 1]} : vector<8x96xf32> to vector<8x32xf32>
    %144 = vector.extract_strided_slice %142 {offsets = [0, 0], sizes = [8, 32], strides = [1, 1]} : vector<8x96xf32> to vector<8x32xf32>
    %145 = arith.addf %143, %144 : vector<8x32xf32>
    %146 = arith.negf %145 : vector<8x32xf32>
    %147 = math.exp %146 : vector<8x32xf32>
    %cst_40 = arith.constant 1.000000e+00 : f32
    %148 = vector.broadcast %cst_40 : f32 to vector<8x32xf32>
    %149 = arith.addf %148, %147 : vector<8x32xf32>
    %150 = arith.divf %148, %149 : vector<8x32xf32>
    %151 = vector.extract_strided_slice %140 {offsets = [0, 32], sizes = [8, 32], strides = [1, 1]} : vector<8x96xf32> to vector<8x32xf32>
    %152 = vector.extract_strided_slice %142 {offsets = [0, 32], sizes = [8, 32], strides = [1, 1]} : vector<8x96xf32> to vector<8x32xf32>
    %153 = arith.addf %151, %152 : vector<8x32xf32>
    %154 = arith.negf %153 : vector<8x32xf32>
    %155 = math.exp %154 : vector<8x32xf32>
    %cst_41 = arith.constant 1.000000e+00 : f32
    %156 = vector.broadcast %cst_41 : f32 to vector<8x32xf32>
    %157 = arith.addf %156, %155 : vector<8x32xf32>
    %158 = arith.divf %156, %157 : vector<8x32xf32>
    %159 = vector.extract_strided_slice %140 {offsets = [0, 64], sizes = [8, 32], strides = [1, 1]} : vector<8x96xf32> to vector<8x32xf32>
    %160 = vector.extract_strided_slice %142 {offsets = [0, 64], sizes = [8, 32], strides = [1, 1]} : vector<8x96xf32> to vector<8x32xf32>
    %c0_42 = arith.constant 0 : index
    %c0_43 = arith.constant 0 : index
    %161 = vector.load %arg6[%c0_42, %c0_43] : memref<1x32xf32, #tpu.memory_space<vmem>>, vector<1x32xf32>
    %162 = vector.broadcast %161 : vector<1x32xf32> to vector<8x32xf32>
    %163 = arith.addf %160, %162 : vector<8x32xf32>
    %164 = arith.mulf %150, %163 : vector<8x32xf32>
    %165 = arith.addf %159, %164 : vector<8x32xf32>
    %166 = math.tanh %165 : vector<8x32xf32>
    %cst_44 = arith.constant 1.000000e+00 : f32
    %167 = vector.broadcast %cst_44 : f32 to vector<8x32xf32>
    %168 = arith.subf %167, %158 : vector<8x32xf32>
    %169 = arith.mulf %168, %166 : vector<8x32xf32>
    %170 = arith.mulf %158, %3 : vector<8x32xf32>
    %171 = arith.addf %169, %170 : vector<8x32xf32>
    %c0_45 = arith.constant 0 : index
    %c0_46 = arith.constant 0 : index
    %172 = vector.load %arg7[%c0_45, %c0_46] : memref<32x128xf32, #tpu.memory_space<vmem>>, vector<32x128xf32>
    %cst_47 = arith.constant dense<0.000000e+00> : vector<8x128xf32>
    %173 = tpu.matmul %171, %172, %cst_47 {dimension_numbers = #tpu.dot_dimension_numbers<[1], [0], [0], [1], [0, 0, 1, 1], [], []>} : vector<8x32xf32>, vector<32x128xf32>, vector<8x128xf32> -> vector<8x128xf32>
    %c0_48 = arith.constant 0 : index
    %c0_49 = arith.constant 0 : index
    %174 = vector.load %arg8[%c0_48, %c0_49] : memref<1x128xf32, #tpu.memory_space<vmem>>, vector<1x128xf32>
    %175 = vector.broadcast %174 : vector<1x128xf32> to vector<8x128xf32>
    %176 = arith.addf %173, %175 : vector<8x128xf32>
    %cst_50 = arith.constant dense<0xFF800000> : vector<8xf32>
    %177 = vector.multi_reduction <maximumf>, %176, %cst_50 [1] : vector<8x128xf32> to vector<8xf32>
    %178 = vector.shape_cast %177 : vector<8xf32> to vector<8x1xf32>
    %179 = vector.broadcast %178 : vector<8x1xf32> to vector<8x128xf32>
    %180 = arith.subf %176, %179 : vector<8x128xf32>
    %181 = math.exp %180 : vector<8x128xf32>
    %cst_51 = arith.constant dense<0.000000e+00> : vector<8xf32>
    %182 = vector.multi_reduction <add>, %181, %cst_51 [1] : vector<8x128xf32> to vector<8xf32>
    %183 = vector.shape_cast %182 : vector<8xf32> to vector<8x1xf32>
    %184 = math.log %183 : vector<8x1xf32>
    %185 = vector.broadcast %184 : vector<8x1xf32> to vector<8x128xf32>
    %186 = arith.subf %180, %185 : vector<8x128xf32>
    %c0_52 = arith.constant 0 : index
    %c0_53 = arith.constant 0 : index
    %c0_54 = arith.constant 0 : index
    %187 = vector.load %arg9[%c0_52, %c0_53, %c0_54] : memref<1x8x128xf32, #tpu.memory_space<vmem>>, vector<1x8x128xf32>
    %188 = vector.shape_cast %187 : vector<1x8x128xf32> to vector<8x128xf32>
    %189 = vector.shape_cast %186 : vector<8x128xf32> to vector<1x8x128xf32>
    tpu.vector_store %arg9[%c0_52, %c0_53, %c0_54], %189 {strides = array<i32>} : memref<1x8x128xf32, #tpu.memory_space<vmem>>, vector<1x8x128xf32>,
    %c0_55 = arith.constant 0 : index
    %c0_56 = arith.constant 0 : index
    %190 = vector.load %arg10[%c0_55, %c0_56] : memref<8x32xf32, #tpu.memory_space<vmem>>, vector<8x32xf32>
    tpu.vector_store %arg10[%c0_55, %c0_56], %171 {strides = array<i32>} : memref<8x32xf32, #tpu.memory_space<vmem>>, vector<8x32xf32>,
    return
  }
  func.func @transform_0(%arg0: i32, %arg1: memref<128xi32, #tpu.memory_space<smem>>) -> (i32, i32) {
    %c0_i32 = arith.constant 0 : i32
    %c0_i32_0 = arith.constant 0 : i32
    %c0_i32_1 = arith.constant 0 : i32
    return %c0_i32, %c0_i32_0 : i32, i32
  }
  func.func @transform_1(%arg0: i32, %arg1: memref<128xi32, #tpu.memory_space<smem>>) -> (i32, i32) {
    %c0_i32 = arith.constant 0 : i32
    %c0_i32_0 = arith.constant 0 : i32
    %c0_i32_1 = arith.constant 0 : i32
    return %c0_i32, %c0_i32_0 : i32, i32
  }
  func.func @transform_2(%arg0: i32, %arg1: memref<128xi32, #tpu.memory_space<smem>>) -> (i32, i32) {
    %c0_i32 = arith.constant 0 : i32
    %c0_i32_0 = arith.constant 0 : i32
    %c0_i32_1 = arith.constant 0 : i32
    return %c0_i32, %c0_i32_0 : i32, i32
  }
  func.func @transform_3(%arg0: i32, %arg1: memref<128xi32, #tpu.memory_space<smem>>) -> (i32, i32) {
    %c0_i32 = arith.constant 0 : i32
    %c0_i32_0 = arith.constant 0 : i32
    %c0_i32_1 = arith.constant 0 : i32
    return %c0_i32, %c0_i32_0 : i32, i32
  }
  func.func @transform_4(%arg0: i32, %arg1: memref<128xi32, #tpu.memory_space<smem>>) -> (i32, i32) {
    %c0_i32 = arith.constant 0 : i32
    %c0_i32_0 = arith.constant 0 : i32
    %c0_i32_1 = arith.constant 0 : i32
    return %c0_i32, %c0_i32_0 : i32, i32
  }
  func.func @transform_5(%arg0: i32, %arg1: memref<128xi32, #tpu.memory_space<smem>>) -> (i32, i32) {
    %c0_i32 = arith.constant 0 : i32
    %c0_i32_0 = arith.constant 0 : i32
    %c0_i32_1 = arith.constant 0 : i32
    return %c0_i32, %c0_i32_0 : i32, i32
  }
  func.func @transform_6(%arg0: i32, %arg1: memref<128xi32, #tpu.memory_space<smem>>) -> (i32, i32) {
    %c0_i32 = arith.constant 0 : i32
    %c0_i32_0 = arith.constant 0 : i32
    %c0_i32_1 = arith.constant 0 : i32
    return %c0_i32, %c0_i32_0 : i32, i32
  }
  func.func @transform_7(%arg0: i32, %arg1: memref<128xi32, #tpu.memory_space<smem>>) -> (i32, i32, i32) {
    %c0_i32 = arith.constant 0 : i32
    %c0_i32_0 = arith.constant 0 : i32
    %c0_i32_1 = arith.constant 0 : i32
    return %arg0, %c0_i32, %c0_i32_0 : i32, i32, i32
  }
  func.func @transform_8(%arg0: i32, %arg1: memref<128xi32, #tpu.memory_space<smem>>) -> (i32, i32) {
    %c0_i32 = arith.constant 0 : i32
    %c0_i32_0 = arith.constant 0 : i32
    %c0_i32_1 = arith.constant 0 : i32
    return %c0_i32, %c0_i32_0 : i32, i32
  }
}

</mosaic_0001>

<bundles_post_ra>
// kernel: generator_unroll.1
= control target key start
LH: loop header
LB: loop body
LE: loop exit
PB: predicated region body
PF: predicated region fallthrough
CT: control target
= control target key end

     0   :  { %s1188_s0 = inlined_call_operand.vmem [shape: s32[128], index: 0, kind: input, shape index: {}]   ;;  %s1189_s1 = inlined_call_operand.vmem [shape: f32[8,32], index: 1, kind: input, shape index: {}]   ;;  %s1190_s2 = inlined_call_operand.vmem [shape: f32[128,96], index: 2, kind: input, shape index: {}]   ;;  %s1191_s3 = inlined_call_operand.vmem [shape: f32[32,96], index: 3, kind: input, shape index: {}]   ;;  %s1192_s4 = inlined_call_operand.vmem [shape: f32[1,96], index: 4, kind: input, shape index: {}]   ;;  %s1193_s5 = inlined_call_operand.vmem [shape: f32[1,32], index: 5, kind: input, shape index: {}]   ;;  %s1194_s6 = inlined_call_operand.vmem [shape: f32[32,128], index: 6, kind: input, shape index: {}]   ;;  %s1195_s7 = inlined_call_operand.vmem [shape: f32[1,128], index: 7, kind: input, shape index: {}]   ;;  %s1196_s8 = inlined_call_operand.vmem [shape: f32[8,8,128], index: 8, kind: output, shape index: {0}]   ;;  %s1197_s9 = inlined_call_operand.vmem [shape: f32[8,32], index: 9, kind: output, shape index: {1}]  }
   0x1   :  { %s15_s11 = sshll.u32 %s1188_s0, 4  ;;  %s16_s11 = int_to_ptr.vmem [resolvable:$true] %s15_s11 }
   0x2   :  { %s860_s12 = scalar_lea.vmem %s16_s11, 16  ;;  %p865_p1 = scmp.lt.s32.totalorder %s16_s11, %s16_s11 }
   0x3   :  { %p861_p0 = scmp.ne.s32.totalorder %s16_s11, %s860_s12  ;;  %p866_p2 = scmp.lt.s32.totalorder %s860_s12, %s860_s12 }
   0x5   :  { %p867_p3 = por %p866_p2, %p865_p1 }
   0x7   :  { %p868_p4 = pnand %p867_p3, %p861_p0 }
   0x9   :  { %871 = shalt.err (!%p868_p4)  }
   0xa   :  { %s882_s13 = smov [#allocation3]  }
   0xb   :  { %18 = dma.vmem_to_smem %s16_s11, 16, %s882_s13, [#allocation2] }
   0xc   :  { %876 = dma.done.wait [#allocation2], 16 }
   0xd   :  { %877 = vsyncadd [#allocation2], 4294967280 }
   0xe   :  { %20 = sfence }
   0xf   :  { %s942_s14 = smov 0  }
  0x10 LB: > { %s734_s0 = sadd.s32 4294967295, %s880_s14   ;;  %p737_p5 = scmp.ge.s32.totalorder %s880_s14, 1  ;;  %s880_s14 = sphi %s942_s14, %s26_s14  }
  0x11   : > { %p257_p6 = scmp.lt.s32.totalorder %s880_s14, 9 }
  0x13   : > { %p258_p7 = pnand %p737_p5, %p257_p6 }
  0x14   : > { %p285_p8 = scmp.lt.s32.totalorder (!%p258_p7), %s734_s0, 7  ;;  %p739_p9 = scmp.ne.s32.totalorder (!%p258_p7), %s734_s0, 0 }
  0x15   : > { %261 = sbr.rel (%p258_p7) target bundleno = 1229 (0x4cd), region = 48 }
  0x1a   : > { %s286_s15 = scalar_select %p285_p8, %s734_s0, 7 }
  0x1b   : > { %292 = sbr.rel (%p739_p9) target bundleno = 34 (0x22), region = 52 }
  0x1c   : > { %s738_s16 = sshll.u32 %s286_s15, 3 }
  0x1d   : > { %s953_s19 = scalar_lea.vmem %s1196_s8, %s738_s16 }
  0x20   : > { %v293_v0 = vld [vmem:[%s1189_s1] sm:$0xff]  ;;  %vm294_vm0 = vcmask 261120  }
  0x21   : > { %295 = vst.msk [vmem:[%s1197_s9] sm:$0xff] %vm294_vm0, %v293_v0 }
  0x22 PF: > { %v393_v1 = vld [vmem:[%s1190_s2 + $0x78] sm:$0xff]  ;;  %v298_v3 = vlaneseq  ;;  %v883_v4 = vmov 0.0   ;;  %v392_v5 = vld [vmem:[%s1190_s2 + $0x70] sm:$0xff]  ;;  %s975_s11 = sshll.u32 %s734_s0, 4  ;;  %v391_v8 = vld [vmem:[%s1190_s2 + $0x68] sm:$0xff]  ;;  %vm475_vm2 = vcmask 261120  }
  0x23   : > { %v474_v2 = vld [vmem:[%s1191_s3 + $0x18] sm:$0xff]  ;;  %778 = vmatprep.subr.mxu0 %v883_v4  ;;  %813 = vmatprep.subr.mxu1 %v883_v4  ;;  %v473_v6 = vld [vmem:[%s1191_s3 + $0x10] sm:$0xff]  ;;  %s981_s12 = sld [smem:[#allocation3 + %s975_s11]]  ;;  %s304_s13 = sadd.s32 1, %s975_s11  ;;  %v472_v9 = vld [vmem:[%s1191_s3 + $0x8] sm:$0xff]  ;;  %vm884_vm4 = vmmov 0  }
  0x24   : > { %779 = vmatpush3.msra.mxu0 %v393_v1  ;;  %814 = vmatpush3.msra.mxu1 %v474_v2  ;;  %v978_v7 = vshrl.u32 %v298_v3, 7  ;;  %s992_s18 = sld [smem:[#allocation3 + %s304_s13]]  ;;  %s309_s20 = sadd.s32 2, %s975_s11  ;;  %v390_v10 = vld [vmem:[%s1190_s2 + $0x60] sm:$0xff]  ;;  %v389_v13 = vld [vmem:[%s1190_s2 + $0x58] sm:$0xff]  ;;  %v388_v15 = vld [vmem:[%s1190_s2 + $0x50] sm:$0xff] }
  0x25   : > { %780 = vmatprep.subr.mxu0 %v883_v4  ;;  %815 = vmatprep.subr.mxu1 %v883_v4  ;;  %s995_s21 = sld [smem:[#allocation3 + %s309_s20]]  ;;  %v471_v11 = vld [vmem:[%s1191_s3] sm:$0xff]  ;;  %s313_s26 = sadd.s32 3, %s975_s11  ;;  %v387_v21 = vld [vmem:[%s1190_s2 + $0x48] sm:$0xff]  ;;  %v385_v29 = vld [vmem:[%s1190_s2 + $0x38] sm:$0xff]  ;;  %v372_v52 = vand.u32 127, %v298_v3 }
  0x26   : > { %781 = vmatpush3.msra.mxu0 %v392_v5  ;;  %816 = vmatpush3.msra.mxu1 %v473_v6  ;;  %s318_s27 = sadd.s32 4, %s975_s11  ;;  %vm300_vm1 = vcmp.eq.s32.totalorder %v978_v7, 0  ;;  %s1008_s28 = sld [smem:[#allocation3 + %s313_s26]]  ;;  %vm308_vm3 = vcmp.eq.s32.totalorder %v978_v7, 1  ;;  %v746_v18 = vld [vmem:[%s1193_s5] ss:$0 sm:$0xff] }
  0x27   : > { %782 = vmatprep.subr.mxu0 %v883_v4  ;;  %817 = vmatprep.subr.mxu1 %v883_v4  ;;  %s322_s29 = sadd.s32 5, %s975_s11  ;;  %s1021_s0 = sld [smem:[#allocation3 + %s318_s27]]  ;;  %vm317_vm5 = vcmp.eq.s32.totalorder %v978_v7, 2  ;;  %v386_v24 = vld [vmem:[%s1190_s2 + $0x40] sm:$0xff]  ;;  %vm326_vm6 = vcmp.eq.s32.totalorder %v978_v7, 3  ;;  %vm335_vm7 = vcmp.eq.s32.totalorder %v978_v7, 4 }
  0x28   : > { %783 = vmatpush3.msra.mxu0 %v391_v8  ;;  %818 = vmatpush3.msra.mxu1 %v472_v9  ;;  %v1016_v12 = vld [vmem:[%s1197_s9] sm:$0xff]  ;;  %s327_s16 = sadd.s32 6, %s975_s11  ;;  %s1026_s17 = sld [smem:[#allocation3 + %s322_s29]]  ;;  %v384_v34 = vld [vmem:[%s1190_s2 + $0x30] sm:$0xff]  ;;  %vm344_vm8 = vcmp.eq.s32.totalorder %v978_v7, 5  ;;  %v383_v39 = vld [vmem:[%s1190_s2 + $0x28] sm:$0xff] }
  0x29   : > { %784 = vmatprep.subr.mxu0 %v883_v4  ;;  %819 = vmatprep.subr.mxu1 %v883_v4  ;;  %v302_v14 = vstv %s981_s12  ;;  %s331_s20 = sadd.s32 7, %s975_s11  ;;  %s1038_s12 = sld [smem:[#allocation3 + %s327_s16]]  ;;  %vm353_vm9 = vcmp.eq.s32.totalorder %v978_v7, 6  ;;  %v382_v44 = vld [vmem:[%s1190_s2 + $0x20] sm:$0xff]  ;;  %vm362_vm10 = vcmp.eq.s32.totalorder %v978_v7, 7  ;;  %v381_v49 = vld [vmem:[%s1190_s2 + $0x18] sm:$0xff] }
  0x2a   : > { %785 = vmatpush3.msra.mxu0 %v390_v10  ;;  %820 = vmatpush3.msra.mxu1 %v471_v11  ;;  %v303_v16 = vsel %vm300_vm1, %v302_v14, 0  ;;  %v306_v17 = vstv %s992_s18  ;;  %s336_s24 = sadd.s32 8, %s975_s11  ;;  %s1049_s27 = sld [smem:[#allocation3 + %s331_s20]]  ;;  %v380_v55 = vld [vmem:[%s1190_s2 + $0x10] sm:$0xff]  ;;  %v379_v57 = vld [vmem:[%s1190_s2 + $0x8] sm:$0xff]  ;;  %v378_v58 = vld [vmem:[%s1190_s2] sm:$0xff] }
  0x2b   : > { %821 = vmatprep.mubr.msk.f32.mxu1 %vm884_vm4, %v883_v4  ;;  %786 = vmatprep.subr.mxu0 %v883_v4  ;;  %v307_v19 = vsel %vm300_vm1, %v306_v17, 0  ;;  %v311_v20 = vstv %s995_s21  ;;  %s340_s18 = sadd.s32 9, %s975_s11  ;;  %s1061_s21 = sld [smem:[#allocation3 + %s336_s24]]  ;;  %v886_v59 = vmov 1.0   ;;  %v742_v2 = vld [vmem:[%s1192_s4] ss:$0 sm:$0xff] }
  0x2c   : > { %822 = vmatmul.mubr.msk.f32.vlgmr.msra.gmra.mxu1 %vm475_vm2, %v1016_v12  ;;  %787 = vmatpush3.msra.mxu0 %v389_v13  ;;  %v312_v22 = vsel %vm308_vm3, %v311_v20, %v303_v16  ;;  %s345_s10 = sadd.s32 10, %s975_s11  ;;  %v315_v23 = vstv %s1008_s28  ;;  %s1065_s13 = sld [smem:[#allocation3 + %s340_s18]]  ;;  %v591_v14 = vld [vmem:[%s1194_s6 + $0x18] sm:$0xff]  ;;  %v589_v16 = vld [vmem:[%s1194_s6 + $0x8] sm:$0xff]  ;;  %v588_v17 = vld [vmem:[%s1194_s6] sm:$0xff] }
  0x2d   : > { %788 = vmatprep.subr.mxu0 %v883_v4  ;;  %810 = vmatprep.mubr.msk.f32.mxu0 %vm884_vm4, %v883_v4  ;;  %s349_s15 = sadd.s32 11, %s975_s11  ;;  %s885_s16 = smov 64   ;;  %v316_v25 = vsel %vm308_vm3, %v315_v23, %v307_v19  ;;  %v320_v26 = vstv %s1021_s0 }
  0x2e   : > { %789 = vmatpush3.msra.mxu0 %v388_v15  ;;  %562 = vrot.lane.b32.xlu0 %v746_v18, %s885_s16  ;;  %s1077_s28 = sld [smem:[#allocation3 + %s345_s10]]  ;;  %s354_s23 = sadd.s32 12, %s975_s11  ;;  %v321_v27 = vsel %vm317_vm5, %v320_v26, %v312_v22  ;;  %v324_v28 = vstv %s1026_s17  ;;  %v590_v15 = vld [vmem:[%s1194_s6 + $0x10] sm:$0xff] }
  0x2f   : > { %790 = vmatprep.subr.mxu0 %v883_v4  ;;  %824 = vmatprep.subr.mxu1 %v883_v4  ;;  %s1084_s24 = sld [smem:[#allocation3 + %s349_s15]]  ;;  %s358_s25 = sadd.s32 13, %s975_s11  ;;  %v325_v30 = vsel %vm317_vm5, %v324_v28, %v316_v25  ;;  %v329_v31 = vstv %s1038_s12 }
  0x30   : > { %791 = vmatpush3.msra.mxu0 %v387_v21  ;;  %832 = vmatprep.mubr.msk.f32.mxu1 %vm884_vm4, %v883_v4  ;;  %s1097_s17 = sld [smem:[#allocation3 + %s354_s23]]  ;;  %s363_s18 = sadd.s32 14, %s975_s11  ;;  %v330_v32 = vsel %vm326_vm6, %v329_v31, %v321_v27  ;;  %v333_v33 = vstv %s1049_s27 }
  0x31   : > { %792 = vmatprep.subr.mxu0 %v883_v4  ;;  %s1103_s29 = sld [smem:[#allocation3 + %s358_s25]]  ;;  %s367_s30 = sadd.s32 15, %s975_s11  ;;  %v334_v35 = vsel %vm326_vm6, %v333_v33, %v325_v30  ;;  %v338_v36 = vstv %s1061_s21  ;;  %825 = vmatpush3.msra.mxu1 %v591_v14 }
  0x32   : > { %793 = vmatpush3.msra.mxu0 %v386_v24  ;;  %s364_s12 = sld [smem:[#allocation3 + %s363_s18]]  ;;  %v339_v37 = vsel %vm335_vm7, %v338_v36, %v330_v32  ;;  %v342_v38 = vstv %s1065_s13  ;;  %s887_s18 = smov 32   ;;  %826 = vmatprep.subr.mxu1 %v883_v4 }
  0x33   : > { %794 = vmatprep.subr.mxu0 %v883_v4  ;;  %s368_s11 = sld [smem:[#allocation3 + %s367_s30]]  ;;  %v343_v40 = vsel %vm335_vm7, %v342_v38, %v334_v35  ;;  %827 = vmatpush3.msra.mxu1 %v590_v15  ;;  %s888_s13 = smov 96  }
  0x34   : > { %795 = vmatpush3.msra.mxu0 %v385_v29  ;;  %v347_v41 = vstv %s1077_s28  ;;  %828 = vmatprep.subr.mxu1 %v883_v4 }
  0x35   : > { %796 = vmatprep.subr.mxu0 %v883_v4  ;;  %v348_v42 = vsel %vm344_vm8, %v347_v41, %v339_v37  ;;  %v351_v43 = vstv %s1084_s24  ;;  %829 = vmatpush3.msra.mxu1 %v589_v16 }
  0x36   : > { %797 = vmatpush3.msra.mxu0 %v384_v34  ;;  %v352_v45 = vsel %vm344_vm8, %v351_v43, %v343_v40  ;;  %v356_v46 = vstv %s1097_s17  ;;  %830 = vmatprep.subr.mxu1 %v883_v4 }
  0x37   : > { %798 = vmatprep.subr.mxu0 %v883_v4  ;;  %v357_v47 = vsel %vm353_vm9, %v356_v46, %v348_v42  ;;  %v360_v48 = vstv %s1103_s29  ;;  %831 = vmatpush3.msra.mxu1 %v588_v17 }
  0x38   : > { %799 = vmatpush3.msra.mxu0 %v383_v39  ;;  %v361_v50 = vsel %vm353_vm9, %v360_v48, %v352_v45  ;;  %v365_v51 = vstv %s364_s12 }
  0x39   : > { %800 = vmatprep.subr.mxu0 %v883_v4  ;;  %v366_v53 = vsel %vm362_vm10, %v365_v51, %v357_v47  ;;  %v369_v54 = vstv %s368_s11 }
  0x3a   : > { %801 = vmatpush3.msra.mxu0 %v382_v44  ;;  %v370_v56 = vsel %vm362_vm10, %v369_v54, %v361_v50  ;;  %vm373_vm11 = vcmp.eq.s32.totalorder %v372_v52, %v366_v53 }
  0x3b   : > { %802 = vmatprep.subr.mxu0 %v883_v4  ;;  %vm374_vm12 = vcmp.eq.s32.totalorder %v372_v52, %v370_v56 }
  0x3c   : > { %803 = vmatpush3.msra.mxu0 %v381_v49  ;;  %vm375_vm13 = vmor %vm373_vm11, %vm374_vm12 }
  0x3d   : > { %804 = vmatprep.subr.mxu0 %v883_v4 }
  0x3e   : > { %805 = vmatpush3.msra.mxu0 %v380_v55 }
  0x3f   : > { %806 = vmatprep.subr.mxu0 %v883_v4 }
  0x40   : > { %807 = vmatpush3.msra.mxu0 %v379_v57 }
  0x41   : > { %808 = vmatprep.subr.mxu0 %v883_v4  ;;  %v747_v4 = vld [vmem:[%s1195_s7] ss:$0 sm:$0xff] }
  0x42   : > { %809 = vmatpush3.msra.mxu0 %v378_v58 }
  0x43   : > { %811 = vmatmul.mubr.msk.f32.vlgmr.msra.gmra.mxu0 %vm375_vm13, %v886_v59 }
  0xa0   : > { %v563_v60 = vpop.permute.xlu0 %562 }
  0xec   : > { %v545_v61 = vpop.f32.mrf.mxu1 }
  0xed   : > { %v565_v62 = vadd.f32 %v563_v60, %v545_v61 }
  0xee   : > { %v823_v63 = vpop.f32.mrf.mxu1 }
  0xef   : > { %567 = vrot.lane.b32.xlu0 %v565_v62, %s885_s16 }
  0xf3   : > { %583 = vrot.lane.b32.xlu0 %v1016_v12, %s887_s18 }
 0x103   : > { %v467_v0 = vpop.f32.mrf.mxu0 }
 0x104   : > { %v468_v3 = vadd.f32 %v742_v2, %v467_v0 }
 0x105   : > { %v812_v1 = vpop.f32.mrf.mxu0 }
 0x106   : > { %v549_v5 = vadd.f32 %v545_v61, %v468_v3 }
 0x108   : > { %v745_v6 = vmul.f32 -1.442695, %v549_v5 }
 0x10a   : > { %850 = vpow2.f32 %v745_v6 }
 0x117   : > { %v851_v7 = vpop.eup %850 }
 0x118   : > { %v553_v8 = vadd.f32 1.0, %v851_v7 }
 0x11a   : > { %852 = vrcp.f32 %v553_v8 }
 0x127   : > { %v853_v9 = vpop.eup %852 }
 0x128   : > { %v577_v20 = vsub.f32 1.0, %v853_v9 }
 0x161   : > { %v568_v10 = vpop.permute.xlu0 %567 }
 0x162   : > { %v570_v11 = vmul.f32 %v853_v9, %v568_v10 }
 0x164   : > { %572 = vrot.lane.b32.xlu1 %v570_v11, %s885_s16 }
 0x165   : > { %v584_v19 = vpop.permute.xlu0 %583 }
 0x166   : > { %v586_v22 = vmul.f32 %v853_v9, %v584_v19 }
 0x1d6   : > { %v573_v13 = vpop.permute.xlu1 %572 }
 0x1d7   : > { %v575_v12 = vadd.f32 %v573_v13, %v468_v3 }
 0x1d9   : > { %854 = vtanh.f32 %v575_v12 }
 0x1e6   : > { %v855_v18 = vpop.eup %854 }
 0x1e7   : > { %579 = vrot.lane.b32.xlu1 %v855_v18, %s888_s13 }
 0x259   : > { %v580_v21 = vpop.permute.xlu1 %579 }
 0x25a   : > { %v582_v23 = vmul.f32 %v580_v21, %v577_v20 }
 0x25c   : > { %v587_v24 = vadd.f32 %v586_v22, %v582_v23 }
 0x25e   : > { %600 = vrot.lane.b32.xlu1 %v587_v24, %s888_s13 }
 0x2d0   : > { %v601_v25 = vpop.permute.xlu1 %600 }
 0x2d1   : > { %686 = vst.msk [vmem:[%s1197_s9] sm:$0xff] %vm475_vm2, %v601_v25  ;;  %833 = vmatmul.mubr.msk.f32.vlgmr.msra.gmra.mxu1 %vm475_vm2, %v601_v25 }
 0x391   : > { %v670_v26 = vpop.f32.mrf.mxu1 }
 0x392   : > { %v671_v27 = vadd.f32 %v747_v4, %v670_v26 }
 0x393   : > { %v834_v28 = vpop.f32.mrf.mxu1 }
 0x394   : > { %674 = vmax.xlane.f32.xlu0 %v671_v27 }
 0x41d   : > { %v675_v29 = vpop.xlane.xlu0 %674 }
 0x41e   : > { %v676_v30 = vsub.f32 %v671_v27, %v675_v29 }
 0x420   : > { %v677_v31 = vmul.f32 1.442695, %v676_v30 }
 0x422   : > { %856 = vpow2.f32 %v677_v31 }
 0x42f   : > { %v857_v32 = vpop.eup %856 }
 0x430   : > { %679 = vadd.xlane.f32.xlu1 %v857_v32 }
 0x4b9   : > { %v680_v33 = vpop.xlane.xlu1 %679 }
 0x4ba   : > { %858 = vlog2.f32 %v680_v33 }
 0x4c7   : > { %v859_v34 = vpop.eup %858 }
 0x4c8   : > { %v682_v35 = vmul.f32 0.6931472, %v859_v34 }
 0x4ca   : > { %v683_v36 = vsub.f32 %v676_v30, %v682_v35 }
 0x4cc   : > { %684 = vst [vmem:[%s953_s19] sm:$0xff] %v683_v36 }
 0x4cd PF: > { %s26_s14 = sadd.s32 1, %s880_s14  }
 0x4ce   : > { %p23_p10 = scmp.ge.s32.totalorder %s26_s14, 10  }
 0x4d0   :  { %25 = sbr.rel (!%p23_p10) target bundleno = 16 (0x10), region = 87 }

</bundles_post_ra>
